<compile_context>
chip_gen: v5e
topology: v5e:2x2
jax: 0.10.0
libtpu: 0.0.40
codegen_flags: <defaults>
</compile_context>

<pallas_src>
import functools

import jax
import jax.numpy as jnp
from jax.experimental import pallas as pl
from jax.experimental.pallas import tpu as pltpu

_SIGMOID_SCALE = 1.0 + 2.0 * 0.001                         # 1.002
_SIGMOID_SHIFT = 0.001
# sigmoid(y)*S - D == (S/2)*tanh(y/2) + (S/2 - D): one EUP tanh + one VPU FMA.
_TANH_SCALE = 0.5 * _SIGMOID_SCALE                          # 0.501
_TANH_OFFSET = 0.5 * _SIGMOID_SCALE - _SIGMOID_SHIFT        # 0.5


# -----------------------------------------------------------------------------
# Pallas kernel: fused FC -> Softplus -> FC -> (folded sigmoid scale), with
# PACK points packed per 128-lane vreg row via block-diagonal weights.
# -----------------------------------------------------------------------------
def _mlp_head_kernel(x_ref, w1_ref, b1_ref, w2c_ref, b2c_ref, w2d_ref, b2d_ref,
                     color_ref, density_ref):
    # x_ref:       (TPM, PACK*C)      f32 (or bf16) features, PACK points/row
    # w1_ref:      (PACK*C, PACK*H)   bf16, block-diagonal first FC (gain folded)
    # b1_ref:      (1, PACK*H)        f32
    # w2c_ref:     (PACK*H, PACK*O)   bf16, block-diagonal color FC
    # b2c_ref:     (1, PACK*O)        f32
    # w2d_ref:     (PACK*H, PACK)     bf16, block-diagonal density FC
    # b2d_ref:     (1, PACK)          f32
    # color_ref:   (TPM, PACK*O)      f32, lane-dense unmasked stores
    # density_ref: (TPM, PACK)        f32, narrow store
    x = x_ref[...].astype(jnp.bfloat16)          # in-kernel cast: no extra HBM pass

    # First FC on the MXU (bf16 x bf16, f32 accumulation) + bias.
    h = jnp.dot(x, w1_ref[...], preferred_element_type=jnp.float32) + b1_ref[...]

    # Numerically stable softplus in f32: max(h,0) + log1p(exp(-|h|)).
    # Cannot NaN on the garbage rows of a ragged last block (store is masked).
    # TODO(synk): on v6e/v7x the log1p(exp(.)) correction could run in bf16 on
    # the EUP (~2x throughput); kept in f32 for density precision.
    h = jnp.maximum(h, 0.0) + jnp.log1p(jnp.exp(-jnp.abs(h)))

    # Second FC in bf16 on the MXU, f32 accumulation, split color/density heads.
    hb = h.astype(jnp.bfloat16)
    yc = jnp.dot(hb, w2c_ref[...], preferred_element_type=jnp.float32) + b2c_ref[...]
    yd = jnp.dot(hb, w2d_ref[...], preferred_element_type=jnp.float32) + b2d_ref[...]

    # Folded sigmoid: sigmoid(yc)*1.002 - 0.001 == 0.501*tanh(0.5*yc) + 0.5.
    color_ref[...] = _TANH_SCALE * jnp.tanh(0.5 * yc) + _TANH_OFFSET
    density_ref[...] = yd


def _round_up(x, m):
    return (x + m - 1) // m * m


def _block_diag(w, pack):
    """Replicate (a, b) weight into a (pack*a, pack*b) block-diagonal matrix."""
    if pack == 1:
        return w
    a, b = w.shape
    eye = jnp.eye(pack, dtype=w.dtype)
    return (eye[:, None, :, None] * w[None, :, None, :]).reshape(pack * a, pack * b)


@functools.partial(jax.jit, static_argnames=("tile_points",))
def mlp_network_forward(point_features, w1t, b1, w2t, b2, tile_points=16384):
    """Pallas implementation of MLPNetwork.forward.

    point_features: (N, M, C_in) float32 (bf16 also accepted)
    w1t: (C_in, H)   -- (weight1 * weight_gain1).T
    b1:  (1, H)      -- bias1 * bias_gain1
    w2t: (H, 1+OUT)  -- (weight2 * weight_gain2).T
    b2:  (1, 1+OUT)  -- bias2 * bias_gain2

    Returns dict with 'color' (N, M, OUT) and 'density' (N, M, 1).
    """
    N, M, C = point_features.shape
    H = w1t.shape[1]
    O_full = w2t.shape[1]          # 1 + output_dim
    O = O_full - 1

    # Points packed per 128-lane vreg row (4 for the EG3D default C=32).
    pack = 128 // C if (C <= 128 and 128 % C == 0) else 1

    rows = N * M
    pad_rows = (-rows) % pack          # < pack; zero in the common EG3D case
    rows_p = rows + pad_rows
    packed_rows = rows_p // pack

    x2d = point_features.reshape(rows, C)
    if pad_rows:
        x2d = jnp.pad(x2d, ((0, pad_rows), (0, 0)))
    # Row-major merge of `pack` consecutive points per lane-dense row: pure view.
    # No wrapper-side dtype cast -- bf16 cast happens inside the kernel.
    xp = x2d.reshape(packed_rows, pack * C)

    # Block-diagonal replicated weights in bf16 for the MXU; biases stay f32.
    w1_bd = _block_diag(w1t.astype(jnp.bfloat16), pack)            # (pack*C, pack*H)
    w2c_bd = _block_diag(w2t[:, 1:].astype(jnp.bfloat16), pack)    # (pack*H, pack*O)
    w2d_bd = _block_diag(w2t[:, 0:1].astype(jnp.bfloat16), pack)   # (pack*H, pack)
    b1_p = jnp.tile(b1.astype(jnp.float32), (1, pack))             # (1, pack*H)
    b2c_p = jnp.tile(b2[:, 1:].astype(jnp.float32), (1, pack))     # (1, pack*O)
    b2d_p = jnp.tile(b2[:, 0:1].astype(jnp.float32), (1, pack))    # (1, pack)

    # Row tile: as large as the VMEM budget comfortably allows, but clamped so
    # the grid has >= 2 steps (megacore sharding across v7x's 2 TensorCores).
    tile_pm = min(max(tile_points // pack, 8), pl.cdiv(packed_rows, 2))
    tile_pm = max(8, _round_up(tile_pm, 8))
    grid0 = pl.cdiv(packed_rows, tile_pm)

    # Truthful cost hint: the block-diagonal matmuls execute pack x the logical
    # FLOPs, and that is what the MXU actually does per step.
    work_rows = grid0 * tile_pm
    cost = pl.CostEstimate(
        flops=int(2 * work_rows * (w1_bd.size + w2c_bd.size + w2d_bd.size)),
        transcendentals=int(work_rows * (2 * pack * H + pack * O)),
        bytes_accessed=int(xp.size * xp.dtype.itemsize
                           + packed_rows * pack * O * 4        # color out (f32)
                           + packed_rows * pack * 4            # density out (f32)
                           + (w1_bd.size + w2c_bd.size + w2d_bd.size) * 2
                           + (b1_p.size + b2c_p.size + b2d_p.size) * 4),
    )

    color_p, density_p = pl.pallas_call(
        _mlp_head_kernel,
        out_shape=(
            jax.ShapeDtypeStruct((packed_rows, pack * O), jnp.float32),
            jax.ShapeDtypeStruct((packed_rows, pack), jnp.float32),
        ),
        grid_spec=pltpu.PrefetchScalarGridSpec(
            num_scalar_prefetch=0,
            grid=(grid0,),
            in_specs=[
                pl.BlockSpec((tile_pm, pack * C), lambda i: (i, 0)),   # x tile
                pl.BlockSpec((pack * C, pack * H), lambda i: (0, 0)),  # W1 (resident)
                pl.BlockSpec((1, pack * H), lambda i: (0, 0)),         # b1
                pl.BlockSpec((pack * H, pack * O), lambda i: (0, 0)),  # W2 color
                pl.BlockSpec((1, pack * O), lambda i: (0, 0)),         # b2 color
                pl.BlockSpec((pack * H, pack), lambda i: (0, 0)),      # W2 density
                pl.BlockSpec((1, pack), lambda i: (0, 0)),             # b2 density
            ],
            out_specs=[
                pl.BlockSpec((tile_pm, pack * O), lambda i: (i, 0)),   # color
                pl.BlockSpec((tile_pm, pack), lambda i: (i, 0)),       # density
            ],
        ),
        compiler_params=pltpu.CompilerParams(
            dimension_semantics=("parallel",),
            vmem_limit_bytes=32 * 1024 * 1024,   # portable budget (v7x has 64 MiB)
        ),
        cost_estimate=cost,
    )(xp, w1_bd, b1_p, w2c_bd, b2c_p, w2d_bd, b2d_p)

    # Packed row i holds points [pack*i, pack*i+pack) contiguously: the
    # reshapes are pure row-major views; the slice only exists when a tiny
    # (< pack rows) pad was required.
    color = color_p.reshape(rows_p, O)
    density = density_p.reshape(rows_p, 1)
    if pad_rows:
        color = color[:rows]
        density = density[:rows]
    return {"color": color.reshape(N, M, O), "density": density.reshape(N, M, 1)}


# -----------------------------------------------------------------------------
# Deterministic parameter construction (matches StyleGAN2 FullyConnectedLayer):
#   weight = randn(out, in) / lr_mul ;  bias = 0
#   effective_weight = weight * (lr_mul / sqrt(in)) ; effective_bias = bias*lr_mul
# -----------------------------------------------------------------------------
def make_mlp_params(key, input_dim, hidden_dim, output_dim, lr_mul=1.0):
    k1, k2 = jax.random.split(key, 2)
    w1 = jax.random.normal(k1, (hidden_dim, input_dim), jnp.float32) / lr_mul
    b1 = jnp.zeros((hidden_dim,), jnp.float32)
    w2 = jax.random.normal(k2, (1 + output_dim, hidden_dim), jnp.float32) / lr_mul
    b2 = jnp.zeros((1 + output_dim,), jnp.float32)

    g1 = lr_mul / jnp.sqrt(jnp.float32(input_dim))
    g2 = lr_mul / jnp.sqrt(jnp.float32(hidden_dim))
    w1t = (w1 * g1).T                      # (input_dim, hidden_dim)
    b1e = (b1 * lr_mul)[None, :]           # (1, hidden_dim)
    w2t = (w2 * g2).T                      # (hidden_dim, 1+output_dim)
    b2e = (b2 * lr_mul)[None, :]           # (1, 1+output_dim)
    return w1t, b1e, w2t, b2e


# -----------------------------------------------------------------------------
# Pure-JAX references for validation.
# -----------------------------------------------------------------------------
def mlp_network_ref(point_features, w1t, b1, w2t, b2, quantize_like_kernel):
    N, M, C = point_features.shape
    x = point_features.reshape(N * M, C).astype(jnp.float32)
    w1 = w1t
    w2 = w2t
    if quantize_like_kernel:
        # Mirror the kernel's bf16 quantization of x, W1, h and W2; the math
        # itself (matmuls, softplus, sigmoid) stays in f32.
        x = x.astype(jnp.bfloat16).astype(jnp.float32)
        w1 = w1t.astype(jnp.bfloat16).astype(jnp.float32)
        w2 = w2t.astype(jnp.bfloat16).astype(jnp.float32)
    h = jnp.dot(x, w1, precision=jax.lax.Precision.HIGHEST) + b1
    h = jnp.logaddexp(h, 0.0)  # softplus
    if quantize_like_kernel:
        h = h.astype(jnp.bfloat16).astype(jnp.float32)
    y = jnp.dot(h, w2, precision=jax.lax.Precision.HIGHEST) + b2
    y = y.reshape(N, M, -1)
    color = jax.nn.sigmoid(y[..., 1:]) * (1.0 + 2.0 * 0.001) - 0.001
    density = y[..., 0:1]
    return {"color": color, "density": density}


if __name__ == "__main__":
    key = jax.random.PRNGKey(0)

    # EG3D defaults: triplane_channels = 96 -> mlp_input_dim = 96 // 3 = 32,
    # mlp_hidden_dim = 64, mlp_output_dim = 32, lr_mul = 1.
    input_dim, hidden_dim, output_dim, lr_mul = 32, 64, 32, 1.0

    k_feat, k_feat2, k_params = jax.random.split(key, 3)
    w1t, b1, w2t, b2 = make_mlp_params(k_params, input_dim, hidden_dim,
                                       output_dim, lr_mul)

    # Case 1: small point batch, N = 2 images, M = 256 points (zero-copy path).
    N, M = 2, 256
    point_features = jax.random.normal(k_feat, (N, M, input_dim), jnp.float32)

    out = mlp_network_forward(point_features, w1t, b1, w2t, b2)
    out = jax.tree_util.tree_map(jax.block_until_ready, out)

    ref_q = mlp_network_ref(point_features, w1t, b1, w2t, b2, True)
    ref_f = mlp_network_ref(point_features, w1t, b1, w2t, b2, False)

    assert out["color"].shape == (N, M, output_dim)
    assert out["density"].shape == (N, M, 1)
    # Tight check against the bf16-quantized reference (same numerics).
    assert jnp.allclose(out["color"], ref_q["color"], atol=5e-3, rtol=5e-3)
    assert jnp.allclose(out["density"], ref_q["density"], atol=5e-3, rtol=5e-3)
    # Loose check against the full-f32 module semantics.
    assert jnp.allclose(out["color"], ref_f["color"], atol=5e-2)
    assert jnp.allclose(out["density"], ref_f["density"], atol=1e-1)

    # Case 2: ragged row count (exercises the tiny pack-pad + ragged last block).
    N2, M2 = 1, 250
    pf2 = jax.random.normal(k_feat2, (N2, M2, input_dim), jnp.float32)
    out2 = mlp_network_forward(pf2, w1t, b1, w2t, b2)
    out2 = jax.tree_util.tree_map(jax.block_until_ready, out2)
    ref2 = mlp_network_ref(pf2, w1t, b1, w2t, b2, True)
    assert out2["color"].shape == (N2, M2, output_dim)
    assert out2["density"].shape == (N2, M2, 1)
    assert jnp.allclose(out2["color"], ref2["color"], atol=5e-3, rtol=5e-3)
    assert jnp.allclose(out2["density"], ref2["density"], atol=5e-3, rtol=5e-3)

    print("KERNEL_OK")
</pallas_src>

<mosaic_0001>
module attributes {stable_mosaic.version = 11 : i64} {
  func.func @_mlp_head_kernel(%arg0: i32, %arg1: memref<64x128xf32, #tpu.memory_space<vmem>>, %arg2: memref<128x256xbf16, #tpu.memory_space<vmem>>, %arg3: memref<1x256xf32, #tpu.memory_space<vmem>>, %arg4: memref<256x128xbf16, #tpu.memory_space<vmem>>, %arg5: memref<1x128xf32, #tpu.memory_space<vmem>>, %arg6: memref<256x4xbf16, #tpu.memory_space<vmem>>, %arg7: memref<1x4xf32, #tpu.memory_space<vmem>>, %arg8: memref<64x128xf32, #tpu.memory_space<vmem>>, %arg9: memref<64x4xf32, #tpu.memory_space<vmem>>) attributes {dimension_semantics = [#tpu.dimension_semantics<parallel>], iteration_bounds = array<i64: 2>, scalar_prefetch = 0 : i64, scratch_operands = 0 : i64, tpu.core_type = #tpu.core_type<tc>, window_params = [{transform_indices = @transform_0, window_bounds = array<i64: 64, 128>}, {pipeline_mode = #tpu.pipeline_mode<synchronous>, transform_indices = @transform_1, window_bounds = array<i64: 128, 256>}, {pipeline_mode = #tpu.pipeline_mode<synchronous>, transform_indices = @transform_2, window_bounds = array<i64: 1, 256>}, {pipeline_mode = #tpu.pipeline_mode<synchronous>, transform_indices = @transform_3, window_bounds = array<i64: 256, 128>}, {pipeline_mode = #tpu.pipeline_mode<synchronous>, transform_indices = @transform_4, window_bounds = array<i64: 1, 128>}, {pipeline_mode = #tpu.pipeline_mode<synchronous>, transform_indices = @transform_5, window_bounds = array<i64: 256, 4>}, {pipeline_mode = #tpu.pipeline_mode<synchronous>, transform_indices = @transform_6, window_bounds = array<i64: 1, 4>}, {transform_indices = @transform_7, window_bounds = array<i64: 64, 128>}, {transform_indices = @transform_8, window_bounds = array<i64: 64, 4>}]} {
    %c0 = arith.constant 0 : index
    %c0_0 = arith.constant 0 : index
    %0 = vector.load %arg1[%c0, %c0_0] : memref<64x128xf32, #tpu.memory_space<vmem>>, vector<64x128xf32>
    %1 = arith.truncf %0 : vector<64x128xf32> to vector<64x128xbf16>
    %c0_1 = arith.constant 0 : index
    %c0_2 = arith.constant 0 : index
    %2 = vector.load %arg2[%c0_1, %c0_2] : memref<128x256xbf16, #tpu.memory_space<vmem>>, vector<128x256xbf16>
    %cst = arith.constant dense<0.000000e+00> : vector<64x256xf32>
    %3 = tpu.matmul %1, %2, %cst {dimension_numbers = #tpu.dot_dimension_numbers<[1], [0], [0], [1], [0, 0, 1, 1], [], []>} : vector<64x128xbf16>, vector<128x256xbf16>, vector<64x256xf32> -> vector<64x256xf32>
    %c0_3 = arith.constant 0 : index
    %c0_4 = arith.constant 0 : index
    %4 = vector.load %arg3[%c0_3, %c0_4] : memref<1x256xf32, #tpu.memory_space<vmem>>, vector<1x256xf32>
    %5 = vector.broadcast %4 : vector<1x256xf32> to vector<64x256xf32>
    %6 = arith.addf %3, %5 : vector<64x256xf32>
    %cst_5 = arith.constant 0.000000e+00 : f32
    %7 = vector.broadcast %cst_5 : f32 to vector<64x256xf32>
    %8 = arith.maximumf %6, %7 : vector<64x256xf32>
    %9 = math.absf %6 : vector<64x256xf32>
    %cst_6 = arith.constant 0.000000e+00 : f32
    %10 = vector.broadcast %cst_6 : f32 to vector<64x256xf32>
    %11 = arith.subf %10, %9 : vector<64x256xf32>
    %12 = math.exp %11 : vector<64x256xf32>
    %13 = math.log1p %12 : vector<64x256xf32>
    %14 = arith.addf %8, %13 : vector<64x256xf32>
    %15 = arith.truncf %14 : vector<64x256xf32> to vector<64x256xbf16>
    %c0_7 = arith.constant 0 : index
    %c0_8 = arith.constant 0 : index
    %16 = vector.load %arg4[%c0_7, %c0_8] : memref<256x128xbf16, #tpu.memory_space<vmem>>, vector<256x128xbf16>
    %cst_9 = arith.constant dense<0.000000e+00> : vector<64x128xf32>
    %17 = tpu.matmul %15, %16, %cst_9 {dimension_numbers = #tpu.dot_dimension_numbers<[1], [0], [0], [1], [0, 0, 1, 1], [], []>} : vector<64x256xbf16>, vector<256x128xbf16>, vector<64x128xf32> -> vector<64x128xf32>
    %c0_10 = arith.constant 0 : index
    %c0_11 = arith.constant 0 : index
    %18 = vector.load %arg5[%c0_10, %c0_11] : memref<1x128xf32, #tpu.memory_space<vmem>>, vector<1x128xf32>
    %19 = vector.broadcast %18 : vector<1x128xf32> to vector<64x128xf32>
    %20 = arith.addf %17, %19 : vector<64x128xf32>
    %c0_12 = arith.constant 0 : index
    %c0_13 = arith.constant 0 : index
    %21 = vector.load %arg6[%c0_12, %c0_13] : memref<256x4xbf16, #tpu.memory_space<vmem>>, vector<256x4xbf16>
    %cst_14 = arith.constant dense<0.000000e+00> : vector<64x4xf32>
    %22 = tpu.matmul %15, %21, %cst_14 {dimension_numbers = #tpu.dot_dimension_numbers<[1], [0], [0], [1], [0, 0, 1, 1], [], []>} : vector<64x256xbf16>, vector<256x4xbf16>, vector<64x4xf32> -> vector<64x4xf32>
    %c0_15 = arith.constant 0 : index
    %c0_16 = arith.constant 0 : index
    %23 = vector.load %arg7[%c0_15, %c0_16] : memref<1x4xf32, #tpu.memory_space<vmem>>, vector<1x4xf32>
    %24 = vector.broadcast %23 : vector<1x4xf32> to vector<64x4xf32>
    %25 = arith.addf %22, %24 : vector<64x4xf32>
    %cst_17 = arith.constant 5.000000e-01 : f32
    %26 = vector.broadcast %cst_17 : f32 to vector<64x128xf32>
    %27 = arith.mulf %26, %20 : vector<64x128xf32>
    %28 = math.tanh %27 : vector<64x128xf32>
    %cst_18 = arith.constant 5.010000e-01 : f32
    %29 = vector.broadcast %cst_18 : f32 to vector<64x128xf32>
    %30 = arith.mulf %29, %28 : vector<64x128xf32>
    %cst_19 = arith.constant 5.000000e-01 : f32
    %31 = vector.broadcast %cst_19 : f32 to vector<64x128xf32>
    %32 = arith.addf %30, %31 : vector<64x128xf32>
    %c0_20 = arith.constant 0 : index
    %c0_21 = arith.constant 0 : index
    %33 = vector.load %arg8[%c0_20, %c0_21] : memref<64x128xf32, #tpu.memory_space<vmem>>, vector<64x128xf32>
    tpu.vector_store %arg8[%c0_20, %c0_21], %32 {strides = array<i32>} : memref<64x128xf32, #tpu.memory_space<vmem>>, vector<64x128xf32>,
    %c0_22 = arith.constant 0 : index
    %c0_23 = arith.constant 0 : index
    %34 = vector.load %arg9[%c0_22, %c0_23] : memref<64x4xf32, #tpu.memory_space<vmem>>, vector<64x4xf32>
    tpu.vector_store %arg9[%c0_22, %c0_23], %25 {strides = array<i32>} : memref<64x4xf32, #tpu.memory_space<vmem>>, vector<64x4xf32>,
    return
  }
  func.func @transform_0(%arg0: i32) -> (i32, i32) {
    %c0_i32 = arith.constant 0 : i32
    %c0_i32_0 = arith.constant 0 : i32
    return %arg0, %c0_i32 : i32, i32
  }
  func.func @transform_1(%arg0: i32) -> (i32, i32) {
    %c0_i32 = arith.constant 0 : i32
    %c0_i32_0 = arith.constant 0 : i32
    %c0_i32_1 = arith.constant 0 : i32
    return %c0_i32, %c0_i32_0 : i32, i32
  }
  func.func @transform_2(%arg0: i32) -> (i32, i32) {
    %c0_i32 = arith.constant 0 : i32
    %c0_i32_0 = arith.constant 0 : i32
    %c0_i32_1 = arith.constant 0 : i32
    return %c0_i32, %c0_i32_0 : i32, i32
  }
  func.func @transform_3(%arg0: i32) -> (i32, i32) {
    %c0_i32 = arith.constant 0 : i32
    %c0_i32_0 = arith.constant 0 : i32
    %c0_i32_1 = arith.constant 0 : i32
    return %c0_i32, %c0_i32_0 : i32, i32
  }
  func.func @transform_4(%arg0: i32) -> (i32, i32) {
    %c0_i32 = arith.constant 0 : i32
    %c0_i32_0 = arith.constant 0 : i32
    %c0_i32_1 = arith.constant 0 : i32
    return %c0_i32, %c0_i32_0 : i32, i32
  }
  func.func @transform_5(%arg0: i32) -> (i32, i32) {
    %c0_i32 = arith.constant 0 : i32
    %c0_i32_0 = arith.constant 0 : i32
    %c0_i32_1 = arith.constant 0 : i32
    return %c0_i32, %c0_i32_0 : i32, i32
  }
  func.func @transform_6(%arg0: i32) -> (i32, i32) {
    %c0_i32 = arith.constant 0 : i32
    %c0_i32_0 = arith.constant 0 : i32
    %c0_i32_1 = arith.constant 0 : i32
    return %c0_i32, %c0_i32_0 : i32, i32
  }
  func.func @transform_7(%arg0: i32) -> (i32, i32) {
    %c0_i32 = arith.constant 0 : i32
    %c0_i32_0 = arith.constant 0 : i32
    return %arg0, %c0_i32 : i32, i32
  }
  func.func @transform_8(%arg0: i32) -> (i32, i32) {
    %c0_i32 = arith.constant 0 : i32
    %c0_i32_0 = arith.constant 0 : i32
    return %arg0, %c0_i32 : i32, i32
  }
}

</mosaic_0001>

<bundles_post_ra>
// kernel: mlp_network_forward.1
= control target key start
LH: loop header
LB: loop body
LE: loop exit
PB: predicated region body
PF: predicated region fallthrough
CT: control target
= control target key end

     0   :  { %s1674_s27 = smov 0   ;;  %s2172_s0 = inlined_call_operand.vmem [shape: f32[128,128], index: 0, kind: input, shape index: {}]   ;;  %s2173_s1 = inlined_call_operand.vmem [shape: bf16[128,256], index: 1, kind: input, shape index: {}]   ;;  %s2174_s2 = inlined_call_operand.vmem [shape: f32[1,256], index: 2, kind: input, shape index: {}]   ;;  %s2175_s3 = inlined_call_operand.vmem [shape: bf16[256,128], index: 3, kind: input, shape index: {}]   ;;  %s2176_s4 = inlined_call_operand.vmem [shape: f32[1,128], index: 4, kind: input, shape index: {}]   ;;  %s2177_s5 = inlined_call_operand.vmem [shape: bf16[256,4], index: 5, kind: input, shape index: {}]   ;;  %s2178_s6 = inlined_call_operand.vmem [shape: f32[1,4], index: 6, kind: input, shape index: {}]   ;;  %s2179_s7 = inlined_call_operand.vmem [shape: f32[128,128], index: 7, kind: output, shape index: {0}]   ;;  %s2180_s8 = inlined_call_operand.vmem [shape: f32[128,4], index: 8, kind: output, shape index: {1}]  }
   0x1 LB: > { %s1262_s28 = sadd.s32 4294967295, %s1627_s27   ;;  %p1266_p0 = scmp.ge.s32.totalorder %s1627_s27, 1  ;;  %s1627_s27 = sphi %s1674_s27, %s19_s27  }
   0x2   : > { %p266_p1 = scmp.lt.s32.totalorder %s1627_s27, 3 }
   0x4   : > { %p267_p2 = pnand %p1266_p0, %p266_p1 }
   0x5   : > { %s1267_s19 = sshll.u32 (!%p267_p2), %s1262_s28, 3 }
   0x6   : > { %270 = sbr.rel (%p267_p2) target bundleno = 417 (0x1a1), region = 48  ;;  %p306_p3 = scmp.lt.s32.totalorder (!%p267_p2), %s1267_s19, 15 }
   0xb   : > { %v1331_v0 = vld [vmem:[%s2173_s1 + $0x70] sm:$0xf]  ;;  %v1482_v1 = vld [vmem:[%s2173_s1 + $0x74] sm:$0xf0]  ;;  %v1481_v2 = vld [vmem:[%s2173_s1 + $0x74] sm:$0xf] }
   0xc   : > { %v1332_v3 = vor.u32 %v1482_v1, %v1331_v0  ;;  %v1333_v4 = vld [vmem:[%s2173_s1 + $0x78] sm:$0xf0]  ;;  %v1323_v5 = vld [vmem:[%s2173_s1 + $0x60] sm:$0xf]  ;;  %v1480_v6 = vld [vmem:[%s2173_s1 + $0x64] sm:$0xf0] }
   0xd   : > { %v1336_v7 = vor.u32 %v1481_v2, %v1333_v4  ;;  %v1479_v8 = vld [vmem:[%s2173_s1 + $0x64] sm:$0xf]  ;;  %v1325_v9 = vld [vmem:[%s2173_s1 + $0x68] sm:$0xf0]  ;;  %v1324_v10 = vor.u32 %v1480_v6, %v1323_v5  ;;  %v1315_v12 = vld [vmem:[%s2173_s1 + $0x50] sm:$0xf] }
   0xe   : > { %437 = vmatpush.bf16.msra.mxu0 %v1332_v3  ;;  %1515 = vmatpush.bf16.msra.mxu2 %v1332_v3  ;;  %v1328_v11 = vor.u32 %v1479_v8, %v1325_v9  ;;  %v1478_v13 = vld [vmem:[%s2173_s1 + $0x54] sm:$0xf0]  ;;  %v1477_v14 = vld [vmem:[%s2173_s1 + $0x54] sm:$0xf]  ;;  %v1317_v15 = vld [vmem:[%s2173_s1 + $0x58] sm:$0xf0] }
   0xf   : > { %466 = vmatpush.bf16.msra.mxu1 %v1336_v7  ;;  %1523 = vmatpush.bf16.msra.mxu3 %v1336_v7  ;;  %v1316_v16 = vor.u32 %v1478_v13, %v1315_v12  ;;  %v1320_v17 = vor.u32 %v1477_v14, %v1317_v15  ;;  %v1307_v18 = vld [vmem:[%s2173_s1 + $0x40] sm:$0xf]  ;;  %v1476_v19 = vld [vmem:[%s2173_s1 + $0x44] sm:$0xf0]  ;;  %v1475_v20 = vld [vmem:[%s2173_s1 + $0x44] sm:$0xf] }
  0x10   : > { %v1309_v21 = vld [vmem:[%s2173_s1 + $0x48] sm:$0xf0]  ;;  %v1308_v22 = vor.u32 %v1476_v19, %v1307_v18  ;;  %v1299_v24 = vld [vmem:[%s2173_s1 + $0x30] sm:$0xf]  ;;  %v1474_v25 = vld [vmem:[%s2173_s1 + $0x34] sm:$0xf0] }
  0x11   : > { %v1312_v23 = vor.u32 %v1475_v20, %v1309_v21  ;;  %v1473_v26 = vld [vmem:[%s2173_s1 + $0x34] sm:$0xf]  ;;  %v1301_v27 = vld [vmem:[%s2173_s1 + $0x38] sm:$0xf0]  ;;  %v1300_v28 = vor.u32 %v1474_v25, %v1299_v24  ;;  %v1291_v30 = vld [vmem:[%s2173_s1 + $0x20] sm:$0xf] }
  0x12   : > { %438 = vmatpush.bf16.msra.mxu0 %v1324_v10  ;;  %1516 = vmatpush.bf16.msra.mxu2 %v1324_v10  ;;  %v1304_v29 = vor.u32 %v1473_v26, %v1301_v27  ;;  %v1472_v31 = vld [vmem:[%s2173_s1 + $0x24] sm:$0xf0]  ;;  %s2202_s19 = smov (!%p306_p3, %s1267_s19), 15  ;;  %v1471_v32 = vld [vmem:[%s2173_s1 + $0x24] sm:$0xf]  ;;  %v1490_v60 = vld [vmem:[%s2175_s3 + $0x38] sm:$0xff] }
  0x13   : > { %467 = vmatpush.bf16.msra.mxu1 %v1328_v11  ;;  %1524 = vmatpush.bf16.msra.mxu3 %v1328_v11  ;;  %v1293_v33 = vld [vmem:[%s2173_s1 + $0x28] sm:$0xf0]  ;;  %v1292_v34 = vor.u32 %v1472_v31, %v1291_v30  ;;  %v1283_v36 = vld [vmem:[%s2173_s1 + $0x10] sm:$0xf]  ;;  %v1470_v37 = vld [vmem:[%s2173_s1 + $0x14] sm:$0xf0] }
  0x14   : > { %v1296_v35 = vor.u32 %v1471_v32, %v1293_v33  ;;  %s1762_s20 = sshll.u32 %s2202_s19, 3  ;;  %v1469_v38 = vld [vmem:[%s2173_s1 + $0x14] sm:$0xf]  ;;  %v1285_v39 = vld [vmem:[%s2173_s1 + $0x18] sm:$0xf0]  ;;  %v1284_v40 = vor.u32 %v1470_v37, %v1283_v36  ;;  %v1488_v4 = vld [vmem:[%s2175_s3 + $0x28] sm:$0xff] }
  0x15   : > { %s1774_s26 = scalar_lea.vmem %s2172_s0, %s1762_s20  ;;  %v1288_v41 = vor.u32 %v1469_v38, %v1285_v39  ;;  %v1275_v42 = vld [vmem:[%s2173_s1] sm:$0xf]  ;;  %v1468_v43 = vld [vmem:[%s2173_s1 + $0x4] sm:$0xf0]  ;;  %v1467_v44 = vld [vmem:[%s2173_s1 + $0x4] sm:$0xf]  ;;  %s2117_s28 = scalar_lea.vmem %s2180_s8, %s1762_s20 }
  0x16   : > { %439 = vmatpush.bf16.msra.mxu0 %v1316_v16  ;;  %1517 = vmatpush.bf16.msra.mxu2 %v1316_v16  ;;  %v1277_v45 = vld [vmem:[%s2173_s1 + $0x8] sm:$0xf0]  ;;  %v323_v46 = vld [vmem:[%s1774_s26] sm:$0xff]  ;;  %v1276_v47 = vor.u32 %v1468_v43, %v1275_v42  ;;  %v325_v54 = vld [vmem:[%s1774_s26 + $0x10] sm:$0xff]  ;;  %s2135_s9 = scalar_lea.vmem %s2179_s7, %s1762_s20 }
  0x17   : > { %468 = vmatpush.bf16.msra.mxu1 %v1320_v17  ;;  %1525 = vmatpush.bf16.msra.mxu3 %v1320_v17  ;;  %v324_v48 = vld [vmem:[%s1774_s26 + $0x8] sm:$0xff]  ;;  %v327_v49 = vld [vmem:[%s1774_s26 + $0x20] sm:$0xff]  ;;  %v1280_v51 = vor.u32 %v1467_v44, %v1277_v45  ;;  %v326_v55 = vld [vmem:[%s1774_s26 + $0x18] sm:$0xff] }
  0x18   : > { %v328_v50 = vld [vmem:[%s1774_s26 + $0x28] sm:$0xff]  ;;  %v331_v52 = vpack.c.bf16 %v324_v48, %v323_v46  ;;  %v329_v56 = vld [vmem:[%s1774_s26 + $0x30] sm:$0xff]  ;;  %v330_v57 = vld [vmem:[%s1774_s26 + $0x38] sm:$0xff]  ;;  %v332_v58 = vpack.c.bf16 %v326_v55, %v325_v54 }
  0x19   : > { %v333_v53 = vpack.c.bf16 %v328_v50, %v327_v49  ;;  %v334_v59 = vpack.c.bf16 %v330_v57, %v329_v56  ;;  %v1498_v61 = vld [vmem:[%s2175_s3 + $0x78] sm:$0xff]  ;;  %v1489_v0 = vld [vmem:[%s2175_s3 + $0x30] sm:$0xff]  ;;  %v1496_v5 = vld [vmem:[%s2175_s3 + $0x68] sm:$0xff] }
  0x1a   : > { %440 = vmatpush.bf16.msra.mxu0 %v1308_v22  ;;  %1518 = vmatpush.bf16.msra.mxu2 %v1308_v22  ;;  %v1506_v62 = vld [vmem:[%s2177_s5 + $0x38] sm:$0xff]  ;;  %v1497_v1 = vld [vmem:[%s2175_s3 + $0x70] sm:$0xff]  ;;  %v1504_v6 = vld [vmem:[%s2177_s5 + $0x28] sm:$0xff] }
  0x1b   : > { %469 = vmatpush.bf16.msra.mxu1 %v1312_v23  ;;  %1526 = vmatpush.bf16.msra.mxu3 %v1312_v23  ;;  %v1514_v63 = vld [vmem:[%s2177_s5 + $0x78] sm:$0xff]  ;;  %v1505_v2 = vld [vmem:[%s2177_s5 + $0x30] sm:$0xff]  ;;  %v1512_v7 = vld [vmem:[%s2177_s5 + $0x68] sm:$0xff] }
  0x1c   : > { %v1513_v3 = vld [vmem:[%s2177_s5 + $0x70] sm:$0xff]  ;;  %v351_v8 = vld [vmem:[%s2174_s2] sm:$0x3]  ;;  %v1486_v16 = vld [vmem:[%s2175_s3 + $0x18] sm:$0xff] }
  0x1d   : > { %v1487_v9 = vld [vmem:[%s2175_s3 + $0x20] sm:$0xff]  ;;  %v1844_v12 = vperm.slane %v351_v8, 0  ;;  %v1849_v14 = vperm.slane %v351_v8, 1  ;;  %v1494_v17 = vld [vmem:[%s2175_s3 + $0x58] sm:$0xff]  ;;  %v1485_v25 = vld [vmem:[%s2175_s3 + $0x10] sm:$0xff] }
  0x1e   : > { %441 = vmatpush.bf16.msra.mxu0 %v1300_v28  ;;  %1519 = vmatpush.bf16.msra.mxu2 %v1300_v28  ;;  %v1495_v10 = vld [vmem:[%s2175_s3 + $0x60] sm:$0xff]  ;;  %v1502_v18 = vld [vmem:[%s2177_s5 + $0x18] sm:$0xff]  ;;  %v1493_v26 = vld [vmem:[%s2175_s3 + $0x50] sm:$0xff] }
  0x1f   : > { %470 = vmatpush.bf16.msra.mxu1 %v1304_v29  ;;  %1527 = vmatpush.bf16.msra.mxu3 %v1304_v29  ;;  %v1503_v11 = vld [vmem:[%s2177_s5 + $0x20] sm:$0xff]  ;;  %v1510_v21 = vld [vmem:[%s2177_s5 + $0x58] sm:$0xff]  ;;  %v1501_v27 = vld [vmem:[%s2177_s5 + $0x10] sm:$0xff] }
  0x20   : > { %v1511_v13 = vld [vmem:[%s2177_s5 + $0x60] sm:$0xff]  ;;  %v1509_v29 = vld [vmem:[%s2177_s5 + $0x50] sm:$0xff]  ;;  %v1484_v36 = vld [vmem:[%s2175_s3 + $0x8] sm:$0xff] }
  0x21   : > { %v1492_v37 = vld [vmem:[%s2175_s3 + $0x48] sm:$0xff]  ;;  %v1483_v45 = vld [vmem:[%s2175_s3] sm:$0xff] }
  0x22   : > { %442 = vmatpush.bf16.msra.mxu0 %v1292_v34  ;;  %1520 = vmatpush.bf16.msra.mxu2 %v1292_v34  ;;  %v1500_v38 = vld [vmem:[%s2177_s5 + $0x8] sm:$0xff]  ;;  %v1491_v46 = vld [vmem:[%s2175_s3 + $0x40] sm:$0xff] }
  0x23   : > { %471 = vmatpush.bf16.msra.mxu1 %v1296_v35  ;;  %1528 = vmatpush.bf16.msra.mxu3 %v1296_v35  ;;  %v1499_v48 = vld [vmem:[%s2177_s5] sm:$0xff] }
  0x24   : > { %v1507_v49 = vld [vmem:[%s2177_s5 + $0x40] sm:$0xff] }
  0x26   : > { %443 = vmatpush.bf16.msra.mxu0 %v1284_v40  ;;  %1521 = vmatpush.bf16.msra.mxu2 %v1284_v40 }
  0x27   : > { %472 = vmatpush.bf16.msra.mxu1 %v1288_v41  ;;  %1529 = vmatpush.bf16.msra.mxu3 %v1288_v41  ;;  %v1508_v41 = vld [vmem:[%s2177_s5 + $0x48] sm:$0xff] }
  0x2a   : > { %444 = vmatpush.bf16.msra.mxu0 %v1276_v47  ;;  %1522 = vmatpush.bf16.msra.mxu2 %v1276_v47 }
  0x2b   : > { %473 = vmatpush.bf16.msra.mxu1 %v1280_v51  ;;  %1530 = vmatpush.bf16.msra.mxu3 %v1280_v51 }
  0x2d   : > { %445 = vmatmul.bf16.vlgmr.msra.gmra.mxu0 %v331_v52  ;;  %455 = vmatmul.bf16.vlgmr.msra.gmra.mxu2 %v333_v53 }
  0x2e   : > { %474 = vmatmul.bf16.vlgmr.msra.gmra.mxu1 %v331_v52  ;;  %484 = vmatmul.bf16.vlgmr.msra.gmra.mxu3 %v333_v53 }
  0x2f   : > { %875 = vmatpush.bf16.msrb.mxu2 %v1490_v60  ;;  %904 = vmatpush.bf16.msrb.mxu3 %v1498_v61 }
  0x30   : > { %1065 = vmatpush.bf16.msrb.mxu0 %v1506_v62  ;;  %1094 = vmatpush.bf16.msrb.mxu1 %v1514_v63 }
  0x33   : > { %876 = vmatpush.bf16.msrb.mxu2 %v1489_v0  ;;  %905 = vmatpush.bf16.msrb.mxu3 %v1497_v1 }
  0x34   : > { %1066 = vmatpush.bf16.msrb.mxu0 %v1505_v2  ;;  %1095 = vmatpush.bf16.msrb.mxu1 %v1513_v3 }
  0x37   : > { %877 = vmatpush.bf16.msrb.mxu2 %v1488_v4  ;;  %906 = vmatpush.bf16.msrb.mxu3 %v1496_v5 }
  0x38   : > { %1067 = vmatpush.bf16.msrb.mxu0 %v1504_v6  ;;  %1096 = vmatpush.bf16.msrb.mxu1 %v1512_v7 }
  0x3b   : > { %878 = vmatpush.bf16.msrb.mxu2 %v1487_v9  ;;  %907 = vmatpush.bf16.msrb.mxu3 %v1495_v10 }
  0x3c   : > { %1068 = vmatpush.bf16.msrb.mxu0 %v1503_v11  ;;  %1097 = vmatpush.bf16.msrb.mxu1 %v1511_v13 }
  0x3d   : > { %450 = vmatmul.bf16.gmra.mxu0 %v332_v58  ;;  %460 = vmatmul.bf16.gmra.mxu2 %v334_v59 }
  0x3e   : > { %479 = vmatmul.bf16.gmra.mxu1 %v332_v58  ;;  %489 = vmatmul.bf16.gmra.mxu3 %v334_v59 }
  0x3f   : > { %879 = vmatpush.bf16.msrb.mxu2 %v1486_v16  ;;  %908 = vmatpush.bf16.msrb.mxu3 %v1494_v17 }
  0x40   : > { %1069 = vmatpush.bf16.msrb.mxu0 %v1502_v18  ;;  %1098 = vmatpush.bf16.msrb.mxu1 %v1510_v21 }
  0x43   : > { %880 = vmatpush.bf16.msrb.mxu2 %v1485_v25  ;;  %909 = vmatpush.bf16.msrb.mxu3 %v1493_v26 }
  0x44   : > { %1070 = vmatpush.bf16.msrb.mxu0 %v1501_v27  ;;  %1099 = vmatpush.bf16.msrb.mxu1 %v1509_v29 }
  0x47   : > { %881 = vmatpush.bf16.msrb.mxu2 %v1484_v36  ;;  %910 = vmatpush.bf16.msrb.mxu3 %v1492_v37 }
  0x48   : > { %1071 = vmatpush.bf16.msrb.mxu0 %v1500_v38  ;;  %1100 = vmatpush.bf16.msrb.mxu1 %v1508_v41 }
  0x4b   : > { %882 = vmatpush.bf16.msrb.mxu2 %v1483_v45  ;;  %911 = vmatpush.bf16.msrb.mxu3 %v1491_v46 }
  0x4c   : > { %1072 = vmatpush.bf16.msrb.mxu0 %v1499_v48  ;;  %1101 = vmatpush.bf16.msrb.mxu1 %v1507_v49 }
  0xaa   : > { %v446_v15 = vpop.f32.mrf.mxu0 }
  0xab   : > { %v1861_v19 = vadd.f32 %v446_v15, %v1844_v12  ;;  %v475_v20 = vpop.f32.mrf.mxu1 }
  0xac   : > { %v1867_v22 = vadd.f32 %v475_v20, %v1849_v14 }
  0xad   : > { %v511_v23 = vand.u32 2147483647, %v1861_v19  ;;  %v495_v3 = vmax.f32 %v1861_v19, 0.0 }
  0xae   : > { %v512_v24 = vand.u32 2147483647, %v1867_v22  ;;  %v496_v4 = vmax.f32 %v1867_v22, 0.0 }
  0xaf   : > { %v527_v28 = vsub.f32 0.0, %v511_v23 }
  0xb0   : > { %v528_v30 = vsub.f32 0.0, %v512_v24  ;;  %v456_v31 = vpop.f32.mrf.mxu2 }
  0xb1   : > { %v543_v32 = vmul.f32 1.442695, %v527_v28  ;;  %v485_v33 = vpop.f32.mrf.mxu3  ;;  %v1916_v50 = vadd.f32 %v456_v31, %v1844_v12 }
  0xb2   : > { %v545_v34 = vmul.f32 1.442695, %v528_v30  ;;  %v448_v35 = vpop.f32.mrf.mxu0  ;;  %v1921_v54 = vadd.f32 %v485_v33, %v1849_v14 }
  0xb3   : > { %1541 = vpow2.f32 %v543_v32  ;;  %v1893_v39 = vadd.f32 %v448_v35, %v1844_v12  ;;  %v477_v40 = vpop.f32.mrf.mxu1  ;;  %v519_v60 = vand.u32 2147483647, %v1916_v50 }
  0xb4   : > { %1543 = vpow2.f32 %v545_v34  ;;  %v1899_v42 = vadd.f32 %v477_v40, %v1849_v14  ;;  %v520_v0 = vand.u32 2147483647, %v1921_v54 }
  0xb5   : > { %v513_v43 = vand.u32 2147483647, %v1893_v39  ;;  %v535_v5 = vsub.f32 0.0, %v519_v60  ;;  %v497_v20 = vmax.f32 %v1893_v39, 0.0 }
  0xb6   : > { %v514_v44 = vand.u32 2147483647, %v1899_v42  ;;  %v536_v8 = vsub.f32 0.0, %v520_v0  ;;  %v498_v23 = vmax.f32 %v1899_v42, 0.0 }
  0xb7   : > { %v529_v47 = vsub.f32 0.0, %v513_v43  ;;  %v559_v25 = vmul.f32 1.442695, %v535_v5 }
  0xb8   : > { %v530_v51 = vsub.f32 0.0, %v514_v44  ;;  %v458_v52 = vpop.f32.mrf.mxu2  ;;  %v1950_v30 = vmul.f32 1.442695, %v536_v8 }
  0xb9   : > { %v1918_v53 = vpop.eup %1541  ;;  %v547_v55 = vmul.f32 1.442695, %v529_v47  ;;  %v487_v58 = vpop.f32.mrf.mxu3  ;;  %v1945_v17 = vadd.f32 %v458_v52, %v1844_v12 }
  0xba   : > { %v1923_v56 = vpop.eup %1543  ;;  %v575_v57 = vadd.f32 1.0, %v1918_v53  ;;  %v549_v61 = vmul.f32 1.442695, %v530_v51  ;;  %v451_v62 = vpop.f32.mrf.mxu0  ;;  %v578_v7 = vmul.f32 -0.5, %v1918_v53  ;;  %v581_v13 = vand.u32 2147483647, %v1918_v53 }
  0xbb   : > { %1545 = vpow2.f32 %v547_v55  ;;  %v584_v59 = vadd.f32 1.0, %v1923_v56  ;;  %v480_v63 = vpop.f32.mrf.mxu1  ;;  %v1930_v1 = vadd.f32 %v451_v62, %v1844_v12  ;;  %v587_v15 = vmul.f32 -0.5, %v1923_v56 }
  0xbc   : > { %1547 = vpow2.f32 %v549_v61  ;;  %v1933_v2 = vadd.f32 %v480_v63, %v1849_v14  ;;  %v590_v18 = vand.u32 2147483647, %v1923_v56  ;;  %v579_v29 = vadd.f32 1.0, %v578_v7 }
  0xbd   : > { %1549 = vlog2.f32 %v575_v57  ;;  %v515_v9 = vand.u32 2147483647, %v1930_v1  ;;  %vm1952_vm0 = vcmp.lt.f32.partialorder %v581_v13, 0.0004427343  ;;  %v588_v36 = vadd.f32 1.0, %v587_v15 }
  0xbe   : > { %1551 = vlog2.f32 %v584_v59  ;;  %v516_v10 = vand.u32 2147483647, %v1933_v2  ;;  %v521_v37 = vand.u32 2147483647, %v1945_v17  ;;  %v1958_v38 = vadd.f32 %v487_v58, %v1849_v14 }
  0xbf   : > { %v531_v26 = vsub.f32 0.0, %v515_v9  ;;  %vm1960_vm1 = vcmp.lt.f32.partialorder %v590_v18, 0.0004427343  ;;  %v580_v57 = vmul.f32 %v1918_v53, %v579_v29  ;;  %v589_v58 = vmul.f32 %v1923_v56, %v588_v36 }
  0xc0   : > { %v1940_v11 = vpop.f32.mrf.mxu2  ;;  %v532_v27 = vsub.f32 0.0, %v516_v10  ;;  %v537_v59 = vsub.f32 0.0, %v521_v37  ;;  %v522_v60 = vand.u32 2147483647, %v1958_v38  ;;  %v500_v41 = vmax.f32 %v1933_v2, 0.0 }
  0xc1   : > { %v1546_v6 = vpop.eup %1545  ;;  %v490_v33 = vpop.f32.mrf.mxu3  ;;  %v551_v46 = vmul.f32 1.442695, %v531_v26 }
  0xc2   : > { %v593_v16 = vadd.f32 1.0, %v1546_v6  ;;  %v596_v21 = vmul.f32 -0.5, %v1546_v6  ;;  %v1548_v24 = vpop.eup %1547  ;;  %v453_v39 = vpop.f32.mrf.mxu0  ;;  %v599_v44 = vand.u32 2147483647, %v1546_v6  ;;  %v553_v47 = vmul.f32 1.442695, %v532_v27 }
  0xc3   : > { %v1550_v28 = vpop.eup %1549  ;;  %v602_v31 = vadd.f32 1.0, %v1548_v24  ;;  %v605_v32 = vmul.f32 -0.5, %v1548_v24  ;;  %v482_v40 = vpop.f32.mrf.mxu1  ;;  %v1965_v51 = vadd.f32 %v453_v39, %v1844_v12  ;;  %v608_v63 = vand.u32 2147483647, %v1548_v24 }
  0xc4   : > { %1553 = vlog2.f32 %v593_v16  ;;  %v1552_v34 = vpop.eup %1551  ;;  %v597_v43 = vadd.f32 1.0, %v596_v21  ;;  %v577_v45 = vmul.f32 0.6931472, %v1550_v28  ;;  %v1968_v52 = vadd.f32 %v482_v40, %v1849_v14 }
  0xc5   : > { %1555 = vlog2.f32 %v602_v31  ;;  %v586_v48 = vmul.f32 0.6931472, %v1552_v34  ;;  %v606_v49 = vadd.f32 1.0, %v605_v32  ;;  %vm600_vm2 = vcmp.lt.f32.partialorder %v599_v44, 0.0004427343 }
  0xc6   : > { %v598_v62 = vmul.f32 %v1546_v6, %v597_v43  ;;  %1557 = vpow2.f32 %v551_v46  ;;  %v583_v5 = vsel %vm1952_vm0, %v580_v57, %v577_v45  ;;  %v517_v7 = vand.u32 2147483647, %v1965_v51 }
  0xc7   : > { %1559 = vpow2.f32 %v553_v47  ;;  %v592_v53 = vsel %vm1960_vm1, %v589_v58, %v586_v48  ;;  %v607_v9 = vmul.f32 %v1548_v24, %v606_v49  ;;  %v518_v10 = vand.u32 2147483647, %v1968_v52 }
  0xc8   : > { %v463_v0 = vpop.f32.mrf.mxu2  ;;  %v533_v15 = vsub.f32 0.0, %v517_v7  ;;  %1561 = vpow2.f32 %v559_v25  ;;  %vm609_vm3 = vcmp.lt.f32.partialorder %v608_v63, 0.0004427343  ;;  %v563_v18 = vmul.f32 1.442695, %v537_v59 }
  0xc9   : > { %v1980_v16 = vadd.f32 %v463_v0, %v1844_v12  ;;  %v534_v21 = vsub.f32 0.0, %v518_v10  ;;  %v719_v26 = vadd.f32 %v583_v5, %v495_v3  ;;  %v538_v28 = vsub.f32 0.0, %v522_v60  ;;  %v492_v31 = vpop.f32.mrf.mxu3 }
  0xca   : > { %v1554_v55 = vpop.eup %1553  ;;  %v555_v29 = vmul.f32 1.442695, %v533_v15  ;;  %v1992_v25 = vadd.f32 %v1940_v11, %v1844_v12  ;;  %v1997_v19 = vadd.f32 %v490_v33, %v1849_v14  ;;  %v2001_v22 = vadd.f32 %v492_v31, %v1849_v14 }
  0xcb   : > { %v595_v61 = vmul.f32 0.6931472, %v1554_v55  ;;  %v1556_v8 = vpop.eup %1555  ;;  %v557_v34 = vmul.f32 1.442695, %v534_v21  ;;  %v525_v3 = vand.u32 2147483647, %v1980_v16 }
  0xcc   : > { %v604_v6 = vmul.f32 0.6931472, %v1556_v8  ;;  %v1984_v24 = vpop.eup %1557  ;;  %1563 = vpow2.f32 %v555_v29  ;;  %v523_v33 = vand.u32 2147483647, %v1992_v25  ;;  %v524_v14 = vand.u32 2147483647, %v1997_v19 }
  0xcd   : > { %v601_v56 = vsel %vm600_vm2, %v598_v62, %v595_v61  ;;  %v1994_v35 = vpop.eup %1559  ;;  %1565 = vpow2.f32 %v557_v34  ;;  %v541_v37 = vsub.f32 0.0, %v525_v3  ;;  %v526_v39 = vand.u32 2147483647, %v2001_v22 }
  0xce   : > { %v721_v13 = vadd.f32 %v601_v56, %v497_v20  ;;  %v610_v27 = vsel %vm609_vm3, %v607_v9, %v604_v6  ;;  %v720_v20 = vadd.f32 %v592_v53, %v496_v4  ;;  %v611_v4 = vadd.f32 1.0, %v1984_v24  ;;  %v2006_v11 = vpop.eup %1561 }
  0xcf   : > { %v722_v32 = vadd.f32 %v610_v27, %v498_v23  ;;  %1567 = vpow2.f32 %v1950_v30  ;;  %v620_v12 = vadd.f32 1.0, %v1994_v35  ;;  %v565_v23 = vmul.f32 1.442695, %v538_v28 }
  0xd0   : > { %v735_v36 = vpack.c.bf16 %v721_v13, %v719_v26  ;;  %1569 = vpow2.f32 %v563_v18  ;;  %v499_v40 = vmax.f32 %v1930_v1, 0.0  ;;  %v614_v43 = vmul.f32 -0.5, %v1984_v24 }
  0xd1   : > { %v736_v42 = vpack.c.bf16 %v722_v32, %v720_v20  ;;  %1571 = vlog2.f32 %v611_v4  ;;  %v647_v44 = vadd.f32 1.0, %v2006_v11  ;;  %v623_v48 = vmul.f32 -0.5, %v1994_v35 }
  0xd2   : > { %883 = vmatmul.bf16.vlgmr.msrb.gmra.mxu2 %v735_v36  ;;  %1073 = vmatmul.bf16.vlgmr.msrb.gmra.mxu0 %v735_v36  ;;  %1573 = vlog2.f32 %v620_v12  ;;  %v1564_v30 = vpop.eup %1563  ;;  %v539_v55 = vsub.f32 0.0, %v523_v33  ;;  %v540_v57 = vsub.f32 0.0, %v524_v14  ;;  %v571_v58 = vmul.f32 1.442695, %v541_v37 }
  0xd3   : > { %912 = vmatmul.bf16.vlgmr.msrb.gmra.mxu3 %v736_v42  ;;  %1102 = vmatmul.bf16.vlgmr.msrb.gmra.mxu1 %v736_v42  ;;  %v1566_v45 = vpop.eup %1565  ;;  %1575 = vpow2.f32 %v565_v23  ;;  %v629_v46 = vadd.f32 1.0, %v1564_v30  ;;  %v632_v47 = vmul.f32 -0.5, %v1564_v30  ;;  %v501_v1 = vmax.f32 %v1965_v51, 0.0 }
  0xd4   : > { %v638_v59 = vadd.f32 1.0, %v1566_v45  ;;  %v542_v61 = vsub.f32 0.0, %v526_v39  ;;  %v641_v62 = vmul.f32 -0.5, %v1566_v45  ;;  %v615_v0 = vadd.f32 1.0, %v614_v43 }
  0xd5   : > { %v2016_v49 = vpop.eup %1567  ;;  %1577 = vlog2.f32 %v629_v46  ;;  %v617_v5 = vand.u32 2147483647, %v1984_v24  ;;  %v626_v7 = vand.u32 2147483647, %v1994_v35  ;;  %v502_v53 = vmax.f32 %v1968_v52, 0.0 }
  0xd6   : > { %v2018_v60 = vpop.eup %1569  ;;  %1579 = vlog2.f32 %v638_v59  ;;  %v633_v56 = vadd.f32 1.0, %v632_v47  ;;  %v635_v9 = vand.u32 2147483647, %v1564_v30  ;;  %v624_v10 = vadd.f32 1.0, %v623_v48 }
  0xd7   : > { %v1572_v63 = vpop.eup %1571  ;;  %v567_v13 = vmul.f32 1.442695, %v539_v55  ;;  %v569_v6 = vmul.f32 1.442695, %v540_v57  ;;  %1581 = vpow2.f32 %v571_v58  ;;  %v573_v18 = vmul.f32 1.442695, %v542_v61 }
  0xd8   : > { %v1574_v8 = vpop.eup %1573  ;;  %v613_v51 = vmul.f32 0.6931472, %v1572_v63  ;;  %v642_v26 = vadd.f32 1.0, %v641_v62  ;;  %v665_v27 = vadd.f32 1.0, %v2018_v60  ;;  %v616_v28 = vmul.f32 %v1984_v24, %v615_v0 }
  0xd9   : > { %v2024_v15 = vpop.eup %1575  ;;  %v622_v21 = vmul.f32 0.6931472, %v1574_v8  ;;  %vm2028_vm4 = vcmp.lt.f32.partialorder %v617_v5, 0.0004427343  ;;  %vm2032_vm5 = vcmp.lt.f32.partialorder %v626_v7, 0.0004427343  ;;  %v634_v32 = vmul.f32 %v1564_v30, %v633_v56 }
  0xda   : > { %v644_v31 = vand.u32 2147483647, %v1566_v45  ;;  %vm2036_vm6 = vcmp.lt.f32.partialorder %v635_v9, 0.0004427343  ;;  %v625_v3 = vmul.f32 %v1994_v35, %v624_v10  ;;  %1583 = vlog2.f32 %v647_v44 }
  0xdb   : > { %v1578_v20 = vpop.eup %1577  ;;  %v619_v24 = vsel %vm2028_vm4, %v616_v28, %v613_v51  ;;  %v656_v4 = vadd.f32 1.0, %v2016_v49  ;;  %v674_v12 = vadd.f32 1.0, %v2024_v15  ;;  %v643_v14 = vmul.f32 %v1566_v45, %v642_v26 }
  0xdc   : > { %v1580_v36 = vpop.eup %1579  ;;  %v631_v42 = vmul.f32 0.6931472, %v1578_v20  ;;  %v628_v23 = vsel %vm2032_vm5, %v625_v3, %v622_v21  ;;  %1585 = vlog2.f32 %v665_v27  ;;  %vm645_vm7 = vcmp.lt.f32.partialorder %v644_v31, 0.0004427343 }
  0xdd   : > { %v640_v33 = vmul.f32 0.6931472, %v1580_v36  ;;  %v2047_v37 = vpop.eup %1581  ;;  %v668_v39 = vmul.f32 -0.5, %v2018_v60  ;;  %1587 = vlog2.f32 %v674_v12  ;;  %v723_v30 = vadd.f32 %v619_v24, %v499_v40 }
  0xde   : > { %v637_v35 = vsel %vm2036_vm6, %v634_v32, %v631_v42  ;;  %v677_v46 = vmul.f32 -0.5, %v2024_v15  ;;  %v724_v47 = vadd.f32 %v628_v23, %v500_v41  ;;  %v650_v45 = vmul.f32 -0.5, %v2006_v11 }
  0xdf   : > { %v725_v43 = vadd.f32 %v637_v35, %v501_v1  ;;  %v646_v44 = vsel %vm645_vm7, %v643_v14, %v640_v33  ;;  %1589 = vlog2.f32 %v656_v4  ;;  %v659_v58 = vmul.f32 -0.5, %v2016_v49 }
  0xe0   : > { %v726_v48 = vadd.f32 %v646_v44, %v502_v53  ;;  %v1584_v55 = vpop.eup %1583  ;;  %1591 = vpow2.f32 %v573_v18  ;;  %v669_v61 = vadd.f32 1.0, %v668_v39  ;;  %v671_v1 = vand.u32 2147483647, %v2018_v60 }
  0xe1   : > { %v737_v57 = vpack.c.bf16 %v725_v43, %v723_v30  ;;  %1593 = vpow2.f32 %v567_v13  ;;  %v678_v2 = vadd.f32 1.0, %v677_v46  ;;  %v651_v62 = vadd.f32 1.0, %v650_v45 }
  0xe2   : > { %v738_v59 = vpack.c.bf16 %v726_v48, %v724_v47  ;;  %v1586_v40 = vpop.eup %1585  ;;  %1595 = vpow2.f32 %v569_v6  ;;  %v680_v63 = vand.u32 2147483647, %v2024_v15  ;;  %v653_v0 = vand.u32 2147483647, %v2006_v11 }
  0xe3   : > { %888 = vmatmul.bf16.gmra.mxu2 %v737_v57  ;;  %1078 = vmatmul.bf16.gmra.mxu0 %v737_v57  ;;  %v1588_v41 = vpop.eup %1587  ;;  %v660_v5 = vadd.f32 1.0, %v659_v58  ;;  %v667_v8 = vmul.f32 0.6931472, %v1586_v40  ;;  %v670_v53 = vmul.f32 %v2018_v60, %v669_v61  ;;  %v662_v56 = vand.u32 2147483647, %v2016_v49 }
  0xe4   : > { %917 = vmatmul.bf16.gmra.mxu3 %v738_v59  ;;  %1107 = vmatmul.bf16.gmra.mxu1 %v738_v59  ;;  %vm2062_vm8 = vcmp.lt.f32.partialorder %v671_v1, 0.0004427343  ;;  %v676_v13 = vmul.f32 0.6931472, %v1588_v41  ;;  %v679_v6 = vmul.f32 %v2024_v15, %v678_v2  ;;  %v649_v18 = vmul.f32 0.6931472, %v1584_v55 }
  0xe5   : > { %v1590_v7 = vpop.eup %1589  ;;  %v652_v21 = vmul.f32 %v2006_v11, %v651_v62  ;;  %vm2068_vm9 = vcmp.lt.f32.partialorder %v680_v63, 0.0004427343  ;;  %vm2072_vm10 = vcmp.lt.f32.partialorder %v653_v0, 0.0004427343  ;;  %v661_v29 = vmul.f32 %v2016_v49, %v660_v5 }
  0xe6   : > { %v1592_v9 = vpop.eup %1591  ;;  %v658_v28 = vmul.f32 0.6931472, %v1590_v7  ;;  %v701_v52 = vadd.f32 1.0, %v2047_v37  ;;  %v673_v15 = vsel %vm2062_vm8, %v670_v53, %v667_v8  ;;  %vm2080_vm11 = vcmp.lt.f32.partialorder %v662_v56, 0.0004427343 }
  0xe7   : > { %v1594_v51 = vpop.eup %1593  ;;  %v710_v11 = vadd.f32 1.0, %v1592_v9  ;;  %v503_v20 = vmax.f32 %v1916_v50, 0.0  ;;  %v505_v32 = vmax.f32 %v1945_v17, 0.0  ;;  %v682_v34 = vsel %vm2068_vm9, %v679_v6, %v676_v13 }
  0xe8   : > { %v1596_v27 = vpop.eup %1595  ;;  %v683_v3 = vadd.f32 1.0, %v1594_v51  ;;  %v504_v49 = vmax.f32 %v1921_v54, 0.0  ;;  %v506_v36 = vmax.f32 %v1958_v38, 0.0  ;;  %v655_v24 = vsel %vm2072_vm10, %v652_v21, %v649_v18 }
  0xe9   : > { %v692_v42 = vadd.f32 1.0, %v1596_v27  ;;  %v729_v4 = vadd.f32 %v673_v15, %v505_v32  ;;  %v664_v12 = vsel %vm2080_vm11, %v661_v29, %v658_v28  ;;  %1597 = vlog2.f32 %v701_v52  ;;  %v2122_v29 = vld [vmem:[%s2176_s4] ss:$0 sm:$0xff] }
  0xea   : > { %v730_v50 = vadd.f32 %v682_v34, %v506_v36  ;;  %v704_v17 = vmul.f32 -0.5, %v2047_v37  ;;  %1599 = vlog2.f32 %v710_v11  ;;  %v727_v23 = vadd.f32 %v655_v24, %v503_v20 }
  0xeb   : > { %1601 = vlog2.f32 %v683_v3  ;;  %v713_v33 = vmul.f32 -0.5, %v1592_v9  ;;  %v728_v14 = vadd.f32 %v664_v12, %v504_v49  ;;  %v686_v54 = vmul.f32 -0.5, %v1594_v51 }
  0xec   : > { %1603 = vlog2.f32 %v692_v42  ;;  %v739_v38 = vpack.c.bf16 %v729_v4, %v727_v23  ;;  %v695_v35 = vmul.f32 -0.5, %v1596_v27  ;;  %v705_v30 = vadd.f32 1.0, %v704_v17 }
  0xed   : > { %v740_v39 = vpack.c.bf16 %v730_v50, %v728_v14  ;;  %v707_v44 = vand.u32 2147483647, %v2047_v37  ;;  %v714_v46 = vadd.f32 1.0, %v713_v33  ;;  %v687_v48 = vadd.f32 1.0, %v686_v54 }
  0xee   : > { %v716_v45 = vand.u32 2147483647, %v1592_v9  ;;  %v689_v57 = vand.u32 2147483647, %v1594_v51  ;;  %v696_v58 = vadd.f32 1.0, %v695_v35  ;;  %v706_v40 = vmul.f32 %v2047_v37, %v705_v30 }
  0xef   : > { %v1598_v43 = vpop.eup %1597  ;;  %v698_v1 = vand.u32 2147483647, %v1596_v27  ;;  %vm2097_vm12 = vcmp.lt.f32.partialorder %v707_v44, 0.0004427343  ;;  %v715_v62 = vmul.f32 %v1592_v9, %v714_v46  ;;  %v688_v0 = vmul.f32 %v1594_v51, %v687_v48 }
  0xf0   : > { %v1600_v47 = vpop.eup %1599  ;;  %v703_v61 = vmul.f32 0.6931472, %v1598_v43  ;;  %vm717_vm13 = vcmp.lt.f32.partialorder %v716_v45, 0.0004427343  ;;  %vm690_vm14 = vcmp.lt.f32.partialorder %v689_v57, 0.0004427343  ;;  %v697_v7 = vmul.f32 %v1596_v27, %v696_v58 }
  0xf1   : > { %v1602_v55 = vpop.eup %1601  ;;  %v712_v41 = vmul.f32 0.6931472, %v1600_v47  ;;  %vm699_vm15 = vcmp.lt.f32.partialorder %v698_v1, 0.0004427343  ;;  %v507_v53 = vmax.f32 %v1992_v25, 0.0  ;;  %v509_v37 = vmax.f32 %v1980_v16, 0.0 }
  0xf2   : > { %v1604_v59 = vpop.eup %1603  ;;  %v685_v63 = vmul.f32 0.6931472, %v1602_v55  ;;  %v709_v8 = vsel %vm2097_vm12, %v706_v40, %v703_v61  ;;  %v508_v10 = vmax.f32 %v1997_v19, 0.0  ;;  %v510_v13 = vmax.f32 %v2001_v22, 0.0  ;;  %v2110_v16 = vld [vmem:[%s2178_s6] ss:$0 sm:$0xff] }
  0xf3   : > { %893 = vmatmul.bf16.gmra.mxu2 %v739_v38  ;;  %1083 = vmatmul.bf16.gmra.mxu0 %v739_v38  ;;  %v694_v5 = vmul.f32 0.6931472, %v1604_v59  ;;  %v718_v56 = vsel %vm717_vm13, %v715_v62, %v712_v41  ;;  %v733_v6 = vadd.f32 %v709_v8, %v509_v37  ;;  %vm1163_vm0 = vcmask 31744  }
  0xf4   : > { %922 = vmatmul.bf16.gmra.mxu3 %v740_v39  ;;  %1112 = vmatmul.bf16.gmra.mxu1 %v740_v39  ;;  %v691_v9 = vsel %vm690_vm14, %v688_v0, %v685_v63  ;;  %v734_v18 = vadd.f32 %v718_v56, %v510_v13 }
  0xf5   : > { %v700_v51 = vsel %vm699_vm15, %v697_v7, %v694_v5  ;;  %v731_v21 = vadd.f32 %v691_v9, %v507_v53 }
  0xf6   : > { %v732_v26 = vadd.f32 %v700_v51, %v508_v10 }
  0xf7   : > { %v741_v27 = vpack.c.bf16 %v733_v6, %v731_v21 }
  0xf8   : > { %v742_v60 = vpack.c.bf16 %v734_v18, %v732_v26 }
 0x103   : > { %898 = vmatmul.bf16.gmra.mxu2 %v741_v27  ;;  %1088 = vmatmul.bf16.gmra.mxu0 %v741_v27 }
 0x104   : > { %927 = vmatmul.bf16.gmra.mxu3 %v742_v60  ;;  %1117 = vmatmul.bf16.gmra.mxu1 %v742_v60 }
 0x14f   : > { %v1074_v25 = vpop.f32.mrf.mxu0 }
 0x150   : > { %v1075_v19 = vadd.f32 %v2110_v16, %v1074_v25  ;;  %v1103_v22 = vpop.f32.mrf.mxu1 }
 0x152   : > { %v1104_v28 = vadd.f32 %v1103_v22, %v1075_v19 }
 0x154   : > { %1164 = vst.msk [vmem:[%s2117_s28] sm:$0xff] %vm1163_vm0, %v1104_v28 }
 0x155   : > { %v884_v52 = vpop.f32.mrf.mxu2 }
 0x156   : > { %v885_v15 = vadd.f32 %v2122_v29, %v884_v52  ;;  %v913_v31 = vpop.f32.mrf.mxu3 }
 0x157   : > { %v1076_v11 = vpop.f32.mrf.mxu0 }
 0x158   : > { %v914_v20 = vadd.f32 %v913_v31, %v885_v15  ;;  %v1077_v32 = vadd.f32 %v2110_v16, %v1076_v11  ;;  %v1105_v34 = vpop.f32.mrf.mxu1 }
 0x15a   : > { %v1123_v3 = vmul.f32 0.5, %v914_v20  ;;  %v1106_v49 = vadd.f32 %v1105_v34, %v1077_v32 }
 0x15c   : > { %1605 = vtanh.f32 %v1123_v3  ;;  %1165 = vst.msk [vmem:[%s2117_s28 + $0x8] sm:$0xff] %vm1163_vm0, %v1106_v49 }
 0x15d   : > { %v886_v36 = vpop.f32.mrf.mxu2 }
 0x15e   : > { %v887_v24 = vadd.f32 %v2122_v29, %v886_v36  ;;  %v915_v42 = vpop.f32.mrf.mxu3 }
 0x160   : > { %v916_v4 = vadd.f32 %v915_v42, %v887_v24  ;;  %v1079_v23 = vpop.f32.mrf.mxu0 }
 0x161   : > { %v1080_v14 = vadd.f32 %v2110_v16, %v1079_v23  ;;  %v1108_v54 = vpop.f32.mrf.mxu1 }
 0x162   : > { %v1606_v12 = vpop.eup %1605  ;;  %v1124_v50 = vmul.f32 0.5, %v916_v4 }
 0x163   : > { %v1139_v17 = vmul.f32 0.501, %v1606_v12  ;;  %v1109_v38 = vadd.f32 %v1108_v54, %v1080_v14 }
 0x164   : > { %1607 = vtanh.f32 %v1124_v50 }
 0x165   : > { %v1147_v33 = vadd.f32 0.5, %v1139_v17  ;;  %1166 = vst.msk [vmem:[%s2117_s28 + $0x10] sm:$0xff] %vm1163_vm0, %v1109_v38 }
 0x166   : > { %v889_v39 = vpop.f32.mrf.mxu2 }
 0x167   : > { %1155 = vst [vmem:[%s2135_s9] sm:$0xff] %v1147_v33  ;;  %v890_v43 = vadd.f32 %v2122_v29, %v889_v39  ;;  %v918_v44 = vpop.f32.mrf.mxu3 }
 0x168   : > { %v1081_v46 = vpop.f32.mrf.mxu0 }
 0x169   : > { %v919_v48 = vadd.f32 %v918_v44, %v890_v43  ;;  %v1082_v45 = vadd.f32 %v2110_v16, %v1081_v46  ;;  %v1110_v55 = vpop.f32.mrf.mxu1 }
 0x16a   : > { %v1608_v35 = vpop.eup %1607 }
 0x16b   : > { %v1140_v30 = vmul.f32 0.501, %v1608_v35  ;;  %v1125_v57 = vmul.f32 0.5, %v919_v48  ;;  %v1111_v58 = vadd.f32 %v1110_v55, %v1082_v45 }
 0x16d   : > { %v1148_v47 = vadd.f32 0.5, %v1140_v30  ;;  %1609 = vtanh.f32 %v1125_v57  ;;  %1167 = vst.msk [vmem:[%s2117_s28 + $0x18] sm:$0xff] %vm1163_vm0, %v1111_v58 }
 0x16e   : > { %v891_v59 = vpop.f32.mrf.mxu2 }
 0x16f   : > { %1156 = vst [vmem:[%s2135_s9 + $0x8] sm:$0xff] %v1148_v47  ;;  %v892_v61 = vadd.f32 %v2122_v29, %v891_v59  ;;  %v920_v40 = vpop.f32.mrf.mxu3 }
 0x170   : > { %v1084_v1 = vpop.f32.mrf.mxu0 }
 0x171   : > { %v921_v2 = vadd.f32 %v920_v40, %v892_v61  ;;  %v1085_v41 = vadd.f32 %v2110_v16, %v1084_v1  ;;  %v1113_v62 = vpop.f32.mrf.mxu1 }
 0x173   : > { %v1610_v63 = vpop.eup %1609  ;;  %v1126_v0 = vmul.f32 0.5, %v921_v2  ;;  %v1114_v5 = vadd.f32 %v1113_v62, %v1085_v41 }
 0x174   : > { %v1141_v7 = vmul.f32 0.501, %v1610_v63 }
 0x175   : > { %1611 = vtanh.f32 %v1126_v0  ;;  %1168 = vst.msk [vmem:[%s2117_s28 + $0x20] sm:$0xff] %vm1163_vm0, %v1114_v5 }
 0x176   : > { %v1149_v8 = vadd.f32 0.5, %v1141_v7  ;;  %v894_v53 = vpop.f32.mrf.mxu2 }
 0x177   : > { %v895_v37 = vadd.f32 %v2122_v29, %v894_v53  ;;  %v923_v56 = vpop.f32.mrf.mxu3 }
 0x178   : > { %1157 = vst [vmem:[%s2135_s9 + $0x10] sm:$0xff] %v1149_v8  ;;  %v1086_v10 = vpop.f32.mrf.mxu0 }
 0x179   : > { %v924_v13 = vadd.f32 %v923_v56, %v895_v37  ;;  %v1087_v9 = vadd.f32 %v2110_v16, %v1086_v10  ;;  %v1115_v6 = vpop.f32.mrf.mxu1 }
 0x17b   : > { %v1612_v51 = vpop.eup %1611  ;;  %v1127_v18 = vmul.f32 0.5, %v924_v13  ;;  %v1116_v21 = vadd.f32 %v1115_v6, %v1087_v9 }
 0x17c   : > { %v1142_v26 = vmul.f32 0.501, %v1612_v51 }
 0x17d   : > { %1613 = vtanh.f32 %v1127_v18  ;;  %1169 = vst.msk [vmem:[%s2117_s28 + $0x28] sm:$0xff] %vm1163_vm0, %v1116_v21 }
 0x17e   : > { %v1150_v27 = vadd.f32 0.5, %v1142_v26  ;;  %v896_v60 = vpop.f32.mrf.mxu2 }
 0x17f   : > { %v897_v25 = vadd.f32 %v2122_v29, %v896_v60  ;;  %v925_v19 = vpop.f32.mrf.mxu3 }
 0x180   : > { %1158 = vst [vmem:[%s2135_s9 + $0x18] sm:$0xff] %v1150_v27  ;;  %v1089_v22 = vpop.f32.mrf.mxu0 }
 0x181   : > { %v926_v28 = vadd.f32 %v925_v19, %v897_v25  ;;  %v1090_v52 = vadd.f32 %v2110_v16, %v1089_v22  ;;  %v1118_v15 = vpop.f32.mrf.mxu1 }
 0x183   : > { %v1614_v31 = vpop.eup %1613  ;;  %v1128_v11 = vmul.f32 0.5, %v926_v28  ;;  %v1119_v20 = vadd.f32 %v1118_v15, %v1090_v52 }
 0x184   : > { %v1143_v32 = vmul.f32 0.501, %v1614_v31 }
 0x185   : > { %1615 = vtanh.f32 %v1128_v11  ;;  %1170 = vst.msk [vmem:[%s2117_s28 + $0x30] sm:$0xff] %vm1163_vm0, %v1119_v20 }
 0x186   : > { %v1151_v34 = vadd.f32 0.5, %v1143_v32  ;;  %v899_v3 = vpop.f32.mrf.mxu2 }
 0x187   : > { %v900_v49 = vadd.f32 %v2122_v29, %v899_v3  ;;  %v928_v36 = vpop.f32.mrf.mxu3 }
 0x188   : > { %1159 = vst [vmem:[%s2135_s9 + $0x20] sm:$0xff] %v1151_v34  ;;  %v1091_v24 = vpop.f32.mrf.mxu0 }
 0x189   : > { %v929_v42 = vadd.f32 %v928_v36, %v900_v49  ;;  %v1092_v4 = vadd.f32 %v2110_v16, %v1091_v24  ;;  %v1120_v12 = vpop.f32.mrf.mxu1 }
 0x18b   : > { %v1616_v50 = vpop.eup %1615  ;;  %v1129_v17 = vmul.f32 0.5, %v929_v42  ;;  %v1121_v23 = vadd.f32 %v1120_v12, %v1092_v4 }
 0x18c   : > { %v1144_v33 = vmul.f32 0.501, %v1616_v50 }
 0x18d   : > { %1617 = vtanh.f32 %v1129_v17  ;;  %1171 = vst.msk [vmem:[%s2117_s28 + $0x38] sm:$0xff] %vm1163_vm0, %v1121_v23 }
 0x18e   : > { %v1152_v14 = vadd.f32 0.5, %v1144_v33  ;;  %v901_v54 = vpop.f32.mrf.mxu2 }
 0x18f   : > { %v902_v38 = vadd.f32 %v2122_v29, %v901_v54  ;;  %v930_v35 = vpop.f32.mrf.mxu3 }
 0x190   : > { %1160 = vst [vmem:[%s2135_s9 + $0x28] sm:$0xff] %v1152_v14 }
 0x191   : > { %v931_v39 = vadd.f32 %v930_v35, %v902_v38 }
 0x193   : > { %v1618_v30 = vpop.eup %1617  ;;  %v1130_v43 = vmul.f32 0.5, %v931_v39 }
 0x194   : > { %v1145_v16 = vmul.f32 0.501, %v1618_v30 }
 0x195   : > { %1619 = vtanh.f32 %v1130_v43 }
 0x196   : > { %v1153_v44 = vadd.f32 0.5, %v1145_v16 }
 0x198   : > { %1161 = vst [vmem:[%s2135_s9 + $0x30] sm:$0xff] %v1153_v44 }
 0x19b   : > { %v1620_v46 = vpop.eup %1619 }
 0x19c   : > { %v1146_v47 = vmul.f32 0.501, %v1620_v46 }
 0x19e   : > { %v1154_v48 = vadd.f32 0.5, %v1146_v47 }
 0x1a0   : > { %1162 = vst [vmem:[%s2135_s9 + $0x38] sm:$0xff] %v1154_v48 }
 0x1a1 PF: > { %s19_s27 = sadd.s32 1, %s1627_s27  }
 0x1a2   : > { %p16_p4 = scmp.ge.s32.totalorder %s19_s27, 4  }
 0x1a4   :  { %18 = sbr.rel (!%p16_p4) target bundleno = 1 (0x1), region = 90 }

</bundles_post_ra>
